<compile_context>
chip_gen: v7x
topology: tpu7x:2x2x1
jax: 0.10.0
libtpu: 0.0.40
codegen_flags: <defaults>
</compile_context>

<pallas_src>
import jax
import jax.numpy as jnp
from jax.experimental import pallas as pl
from jax.experimental.pallas import tpu as pltpu

IN_FEATURES = 28 * 28          # 784
HIDDEN = 100
NUM_CLASSES = 10

HIDDEN_PAD = 128               # lane-aligned hidden width (inside kernel only)
CLASS_PAD = 128                # lane-aligned logits width (inside kernel only)

NEG_BIG = -1e30                # bias on padded class lanes -> exp() == 0


def mlp_kernel(x_ref, w1_ref, b1_ref, w2_ref, b2_ref, w3_ref, b3_ref, out_ref):
    # x tile arrives raw f32 (tm, 784); cast to bf16 in-kernel so no extra
    # XLA pad/cast pass over the batch is needed in HBM.
    x = x_ref[...].astype(jnp.bfloat16)

    h1 = jnp.dot(x, w1_ref[...], preferred_element_type=jnp.float32) + b1_ref[...]
    h1 = jnp.maximum(h1, 0.0)

    h2 = jnp.dot(h1.astype(jnp.bfloat16), w2_ref[...],
                 preferred_element_type=jnp.float32) + b2_ref[...]
    h2 = jnp.maximum(h2, 0.0)

    logits = jnp.dot(h2.astype(jnp.bfloat16), w3_ref[...],
                     preferred_element_type=jnp.float32) + b3_ref[...]

    # Numerically stable row softmax over the 128 padded class lanes; padded
    # lanes carry a ~-1e30 bias so their exp() underflows to exactly 0.
    m = jnp.max(logits, axis=-1, keepdims=True)
    e = jnp.exp(logits - m)
    denom = jnp.sum(e, axis=-1, keepdims=True)
    probs = e / denom            # exact divide: rows sum to 1, cost is hidden

    # Store only the 10 real class lanes: tiny masked store instead of a
    # 128-lane padded writeback plus an XLA slice afterwards.
    out_ref[...] = probs[:, :NUM_CLASSES].astype(out_ref.dtype)


def _round_up(x, m):
    return ((x + m - 1) // m) * m


def prepare_params(params):
    """Zero-pad parameters to lane-aligned shapes; weights cast to bf16."""
    w1, b1, w2, b2, w3, b3 = params

    w1p = jnp.zeros((IN_FEATURES, HIDDEN_PAD), jnp.float32).at[:, :HIDDEN].set(w1)
    b1p = jnp.zeros((1, HIDDEN_PAD), jnp.float32).at[:, :HIDDEN].set(b1)
    w2p = jnp.zeros((HIDDEN_PAD, HIDDEN_PAD), jnp.float32).at[:HIDDEN, :HIDDEN].set(w2)
    b2p = jnp.zeros((1, HIDDEN_PAD), jnp.float32).at[:, :HIDDEN].set(b2)
    w3p = jnp.zeros((HIDDEN_PAD, CLASS_PAD), jnp.float32).at[:HIDDEN, :NUM_CLASSES].set(w3)
    # Padded class lanes get a huge negative bias so softmax ignores them.
    b3p = jnp.full((1, CLASS_PAD), NEG_BIG, jnp.float32).at[:, :NUM_CLASSES].set(b3)

    return (w1p.astype(jnp.bfloat16), b1p,
            w2p.astype(jnp.bfloat16), b2p,
            w3p.astype(jnp.bfloat16), b3p)


def mlp_forward(x_nchw, padded_params, *, tm=None):
    """x_nchw: (B, 1, 28, 28) float32. Returns (B, NUM_CLASSES) softmax probs."""
    w1p, b1p, w2p, b2p, w3p, b3p = padded_params
    B = x_nchw.shape[0]

    # torch.flatten(x, 1) — no padding, no cast; the kernel consumes raw f32.
    x = x_nchw.reshape(B, -1).astype(jnp.float32)
    assert x.shape[1] == IN_FEATURES

    if tm is None:
        # Big tiles amortize the ~0.35 us/step overhead; cap at 1024 rows
        # (~3.2 MiB f32 x-tile, double-buffered), and aim for >= 4 tiles so
        # both v7x TensorCores get work and pipelining has >1 step per core.
        tm = min(1024, max(8, _round_up(pl.cdiv(B, 4), 8)))
    assert tm % 8 == 0
    grid = (pl.cdiv(B, tm),)     # last tile may be partial: OOB rows masked

    # Weights / biases: one block == full array, constant index -> resident
    # in VMEM, DMA'd only once.
    resident = lambda shape: pl.BlockSpec(shape, lambda i: (0, 0))

    out = pl.pallas_call(
        mlp_kernel,
        out_shape=jax.ShapeDtypeStruct((B, NUM_CLASSES), jnp.float32),
        grid=grid,
        in_specs=[
            pl.BlockSpec((tm, IN_FEATURES), lambda i: (i, 0)),   # raw x tile
            resident(w1p.shape), resident(b1p.shape),
            resident(w2p.shape), resident(b2p.shape),
            resident(w3p.shape), resident(b3p.shape),
        ],
        out_specs=pl.BlockSpec((tm, NUM_CLASSES), lambda i: (i, 0)),
        compiler_params=pltpu.CompilerParams(
            dimension_semantics=("parallel",),   # shard batch tiles on v7x's 2 TCs
            vmem_limit_bytes=32 << 20,           # actual footprint << 32 MiB
        ),
    )(x, w1p, b1p, w2p, b2p, w3p, b3p)

    return out


def init_params(key):
    """Deterministic synthetic parameters matching nn.Linear shapes
    (stored transposed: (in, out)); biases stored as (1, out)."""
    k1, k2, k3, k4, k5, k6 = jax.random.split(key, 6)

    def uniform(k, shape, fan_in):
        bound = 1.0 / jnp.sqrt(fan_in)
        return jax.random.uniform(k, shape, jnp.float32, -bound, bound)

    w1 = uniform(k1, (IN_FEATURES, HIDDEN), IN_FEATURES)
    b1 = uniform(k2, (1, HIDDEN), IN_FEATURES)
    w2 = uniform(k3, (HIDDEN, HIDDEN), HIDDEN)
    b2 = uniform(k4, (1, HIDDEN), HIDDEN)
    w3 = uniform(k5, (HIDDEN, NUM_CLASSES), HIDDEN)
    b3 = uniform(k6, (1, NUM_CLASSES), HIDDEN)
    return (w1, b1, w2, b2, w3, b3)


def reference_forward(x_nchw, params):
    """Pure-JAX f32 reference (matches the PyTorch module)."""
    w1, b1, w2, b2, w3, b3 = params
    x = x_nchw.reshape(x_nchw.shape[0], -1)
    h1 = jnp.maximum(x @ w1 + b1, 0.0)
    h2 = jnp.maximum(h1 @ w2 + b2, 0.0)
    logits = h2 @ w3 + b3
    return jax.nn.softmax(logits, axis=1)


if __name__ == "__main__":
    key = jax.random.PRNGKey(0)
    k_params, k_x1, k_x2 = jax.random.split(key, 3)

    params = init_params(k_params)
    padded = prepare_params(params)

    # Small MNIST-shaped batch (single partial tile: 2 rows in an 8-row block).
    x_small = jax.random.normal(k_x1, (2, 1, 28, 28), dtype=jnp.float32)
    out_small = jax.block_until_ready(mlp_forward(x_small, padded))
    ref_small = reference_forward(x_small, params)
    assert out_small.shape == (2, NUM_CLASSES)
    # Tolerance relaxed vs. the f32 reference because matmul inputs are bf16.
    assert jnp.allclose(out_small, ref_small, atol=2e-2, rtol=2e-2)
    assert jnp.allclose(jnp.sum(out_small, axis=1), 1.0, atol=1e-3)

    # Larger batch: >=4-tile grid (tm=80) with a partial last tile (300 % 80).
    x_big = jax.random.normal(k_x2, (300, 1, 28, 28), dtype=jnp.float32)
    out_big = jax.block_until_ready(mlp_forward(x_big, padded))
    ref_big = reference_forward(x_big, params)
    assert out_big.shape == (300, NUM_CLASSES)
    assert jnp.allclose(out_big, ref_big, atol=2e-2, rtol=2e-2)
    assert jnp.allclose(jnp.sum(out_big, axis=1), 1.0, atol=1e-3)

    print("KERNEL_OK")
</pallas_src>

<mosaic_0001>
module attributes {stable_mosaic.version = 11 : i64} {
  func.func @mlp_kernel(%arg0: i32, %arg1: memref<8x784xf32, #tpu.memory_space<vmem>>, %arg2: memref<784x128xbf16, #tpu.memory_space<vmem>>, %arg3: memref<1x128xf32, #tpu.memory_space<vmem>>, %arg4: memref<128x128xbf16, #tpu.memory_space<vmem>>, %arg5: memref<1x128xf32, #tpu.memory_space<vmem>>, %arg6: memref<128x128xbf16, #tpu.memory_space<vmem>>, %arg7: memref<1x128xf32, #tpu.memory_space<vmem>>, %arg8: memref<8x10xf32, #tpu.memory_space<vmem>>) attributes {dimension_semantics = [#tpu.dimension_semantics<parallel>], iteration_bounds = array<i64: 1>, scalar_prefetch = 0 : i64, scratch_operands = 0 : i64, tpu.core_type = #tpu.core_type<tc>, window_params = [{transform_indices = @transform_0, window_bounds = array<i64: 8, 784>}, {pipeline_mode = #tpu.pipeline_mode<synchronous>, transform_indices = @transform_1, window_bounds = array<i64: 784, 128>}, {pipeline_mode = #tpu.pipeline_mode<synchronous>, transform_indices = @transform_2, window_bounds = array<i64: 1, 128>}, {pipeline_mode = #tpu.pipeline_mode<synchronous>, transform_indices = @transform_3, window_bounds = array<i64: 128, 128>}, {pipeline_mode = #tpu.pipeline_mode<synchronous>, transform_indices = @transform_4, window_bounds = array<i64: 1, 128>}, {pipeline_mode = #tpu.pipeline_mode<synchronous>, transform_indices = @transform_5, window_bounds = array<i64: 128, 128>}, {pipeline_mode = #tpu.pipeline_mode<synchronous>, transform_indices = @transform_6, window_bounds = array<i64: 1, 128>}, {transform_indices = @transform_7, window_bounds = array<i64: 8, 10>}]} {
    %c0 = arith.constant 0 : index
    %c0_0 = arith.constant 0 : index
    %0 = vector.load %arg1[%c0, %c0_0] : memref<8x784xf32, #tpu.memory_space<vmem>>, vector<8x784xf32>
    %1 = arith.truncf %0 : vector<8x784xf32> to vector<8x784xbf16>
    %c0_1 = arith.constant 0 : index
    %c0_2 = arith.constant 0 : index
    %2 = vector.load %arg2[%c0_1, %c0_2] : memref<784x128xbf16, #tpu.memory_space<vmem>>, vector<784x128xbf16>
    %cst = arith.constant dense<0.000000e+00> : vector<8x128xf32>
    %3 = tpu.matmul %1, %2, %cst {dimension_numbers = #tpu.dot_dimension_numbers<[1], [0], [0], [1], [0, 0, 1, 1], [], []>} : vector<8x784xbf16>, vector<784x128xbf16>, vector<8x128xf32> -> vector<8x128xf32>
    %c0_3 = arith.constant 0 : index
    %c0_4 = arith.constant 0 : index
    %4 = vector.load %arg3[%c0_3, %c0_4] : memref<1x128xf32, #tpu.memory_space<vmem>>, vector<1x128xf32>
    %5 = vector.broadcast %4 : vector<1x128xf32> to vector<8x128xf32>
    %6 = arith.addf %3, %5 : vector<8x128xf32>
    %cst_5 = arith.constant 0.000000e+00 : f32
    %7 = vector.broadcast %cst_5 : f32 to vector<8x128xf32>
    %8 = arith.maximumf %6, %7 : vector<8x128xf32>
    %9 = arith.truncf %8 : vector<8x128xf32> to vector<8x128xbf16>
    %c0_6 = arith.constant 0 : index
    %c0_7 = arith.constant 0 : index
    %10 = vector.load %arg4[%c0_6, %c0_7] : memref<128x128xbf16, #tpu.memory_space<vmem>>, vector<128x128xbf16>
    %cst_8 = arith.constant dense<0.000000e+00> : vector<8x128xf32>
    %11 = tpu.matmul %9, %10, %cst_8 {dimension_numbers = #tpu.dot_dimension_numbers<[1], [0], [0], [1], [0, 0, 1, 1], [], []>} : vector<8x128xbf16>, vector<128x128xbf16>, vector<8x128xf32> -> vector<8x128xf32>
    %c0_9 = arith.constant 0 : index
    %c0_10 = arith.constant 0 : index
    %12 = vector.load %arg5[%c0_9, %c0_10] : memref<1x128xf32, #tpu.memory_space<vmem>>, vector<1x128xf32>
    %13 = vector.broadcast %12 : vector<1x128xf32> to vector<8x128xf32>
    %14 = arith.addf %11, %13 : vector<8x128xf32>
    %cst_11 = arith.constant 0.000000e+00 : f32
    %15 = vector.broadcast %cst_11 : f32 to vector<8x128xf32>
    %16 = arith.maximumf %14, %15 : vector<8x128xf32>
    %17 = arith.truncf %16 : vector<8x128xf32> to vector<8x128xbf16>
    %c0_12 = arith.constant 0 : index
    %c0_13 = arith.constant 0 : index
    %18 = vector.load %arg6[%c0_12, %c0_13] : memref<128x128xbf16, #tpu.memory_space<vmem>>, vector<128x128xbf16>
    %cst_14 = arith.constant dense<0.000000e+00> : vector<8x128xf32>
    %19 = tpu.matmul %17, %18, %cst_14 {dimension_numbers = #tpu.dot_dimension_numbers<[1], [0], [0], [1], [0, 0, 1, 1], [], []>} : vector<8x128xbf16>, vector<128x128xbf16>, vector<8x128xf32> -> vector<8x128xf32>
    %c0_15 = arith.constant 0 : index
    %c0_16 = arith.constant 0 : index
    %20 = vector.load %arg7[%c0_15, %c0_16] : memref<1x128xf32, #tpu.memory_space<vmem>>, vector<1x128xf32>
    %21 = vector.broadcast %20 : vector<1x128xf32> to vector<8x128xf32>
    %22 = arith.addf %19, %21 : vector<8x128xf32>
    %cst_17 = arith.constant dense<0xFF800000> : vector<8xf32>
    %23 = vector.multi_reduction <maximumf>, %22, %cst_17 [1] : vector<8x128xf32> to vector<8xf32>
    %24 = vector.shape_cast %23 : vector<8xf32> to vector<8x1xf32>
    %25 = vector.broadcast %24 : vector<8x1xf32> to vector<8x128xf32>
    %26 = arith.subf %22, %25 : vector<8x128xf32>
    %27 = math.exp %26 : vector<8x128xf32>
    %cst_18 = arith.constant dense<0.000000e+00> : vector<8xf32>
    %28 = vector.multi_reduction <add>, %27, %cst_18 [1] : vector<8x128xf32> to vector<8xf32>
    %29 = vector.shape_cast %28 : vector<8xf32> to vector<8x1xf32>
    %30 = vector.broadcast %29 : vector<8x1xf32> to vector<8x128xf32>
    %31 = arith.divf %27, %30 : vector<8x128xf32>
    %32 = vector.extract_strided_slice %31 {offsets = [0, 0], sizes = [8, 10], strides = [1, 1]} : vector<8x128xf32> to vector<8x10xf32>
    %c0_19 = arith.constant 0 : index
    %c0_20 = arith.constant 0 : index
    %33 = vector.load %arg8[%c0_19, %c0_20] : memref<8x10xf32, #tpu.memory_space<vmem>>, vector<8x10xf32>
    tpu.vector_store %arg8[%c0_19, %c0_20], %32 {strides = array<i32>} : memref<8x10xf32, #tpu.memory_space<vmem>>, vector<8x10xf32>,
    return
  }
  func.func @transform_0(%arg0: i32) -> (i32, i32) {
    %c0_i32 = arith.constant 0 : i32
    %c0_i32_0 = arith.constant 0 : i32
    return %arg0, %c0_i32 : i32, i32
  }
  func.func @transform_1(%arg0: i32) -> (i32, i32) {
    %c0_i32 = arith.constant 0 : i32
    %c0_i32_0 = arith.constant 0 : i32
    %c0_i32_1 = arith.constant 0 : i32
    return %c0_i32, %c0_i32_0 : i32, i32
  }
  func.func @transform_2(%arg0: i32) -> (i32, i32) {
    %c0_i32 = arith.constant 0 : i32
    %c0_i32_0 = arith.constant 0 : i32
    %c0_i32_1 = arith.constant 0 : i32
    return %c0_i32, %c0_i32_0 : i32, i32
  }
  func.func @transform_3(%arg0: i32) -> (i32, i32) {
    %c0_i32 = arith.constant 0 : i32
    %c0_i32_0 = arith.constant 0 : i32
    %c0_i32_1 = arith.constant 0 : i32
    return %c0_i32, %c0_i32_0 : i32, i32
  }
  func.func @transform_4(%arg0: i32) -> (i32, i32) {
    %c0_i32 = arith.constant 0 : i32
    %c0_i32_0 = arith.constant 0 : i32
    %c0_i32_1 = arith.constant 0 : i32
    return %c0_i32, %c0_i32_0 : i32, i32
  }
  func.func @transform_5(%arg0: i32) -> (i32, i32) {
    %c0_i32 = arith.constant 0 : i32
    %c0_i32_0 = arith.constant 0 : i32
    %c0_i32_1 = arith.constant 0 : i32
    return %c0_i32, %c0_i32_0 : i32, i32
  }
  func.func @transform_6(%arg0: i32) -> (i32, i32) {
    %c0_i32 = arith.constant 0 : i32
    %c0_i32_0 = arith.constant 0 : i32
    %c0_i32_1 = arith.constant 0 : i32
    return %c0_i32, %c0_i32_0 : i32, i32
  }
  func.func @transform_7(%arg0: i32) -> (i32, i32) {
    %c0_i32 = arith.constant 0 : i32
    %c0_i32_0 = arith.constant 0 : i32
    return %arg0, %c0_i32 : i32, i32
  }
}

</mosaic_0001>

<bundles_post_ra>
// kernel: tpu_custom_call.1
= control target key start
LH: loop header
LB: loop body
LE: loop exit
PB: predicated region body
PF: predicated region fallthrough
CT: control target
= control target key end

     0   :  { %12 = vsyncpa [#allocation3], 0  ;;  %s1590_s0 = inlined_call_operand.hbm [shape: f32[2,784], index: 0, kind: input, shape index: {}]   ;;  %s1591_s1 = inlined_call_operand.hbm [shape: bf16[784,128], index: 1, kind: input, shape index: {}]   ;;  %s1592_s2 = inlined_call_operand.vmem [shape: f32[1,128], index: 2, kind: input, shape index: {}]   ;;  %s1593_s3 = inlined_call_operand.hbm [shape: bf16[128,128], index: 3, kind: input, shape index: {}]   ;;  %s1594_s4 = inlined_call_operand.vmem [shape: f32[1,128], index: 4, kind: input, shape index: {}]   ;;  %s1595_s5 = inlined_call_operand.hbm [shape: bf16[128,128], index: 5, kind: input, shape index: {}]   ;;  %s1596_s6 = inlined_call_operand.vmem [shape: f32[1,128], index: 6, kind: input, shape index: {}]   ;;  %s1597_s7 = inlined_call_operand.hbm [shape: f32[2,10], index: 7, kind: output, shape index: {}]  }
   0x1   :  { %13 = vsyncpa [#allocation6], 0 }
   0x2   :  { %14 = vsyncpa [#allocation9], 0 }
   0x3   :  { %15 = vsyncpa [#allocation4], 0 }
   0x4   :  { %20 = vsyncadd [#allocation3], 672  ;;  %s1417_s24 = smov [#allocation5]   ;;  %s1299_s28 = scalar_lea.hbm %s1591_s1, 6272 }
   0x5   :  { %s33_s25 = sshll.u32 %s1417_s24, 4  ;;  %p1300_p0 = scmp.ne.s32.totalorder %s1591_s1, %s1299_s28  ;;  %s34_s25 = int_to_ptr.vmem [resolvable:$true] %s33_s25 }
   0x6   :  { %p1303_p1 = scmp.lt.u32.totalorder %s1299_s28, %s1591_s1 }
   0x8   :  { %p1305_p2 = pnand %p1303_p1, %p1300_p0 }
   0xa   :  { %1308 = shalt.err (!%p1305_p2)
}
   0xb   :  { %s1309_s10 = scalar_lea.vmem %s34_s25, 6272  ;;  %p1314_p4 = scmp.lt.s32.totalorder %s34_s25, %s34_s25 }
   0xc   :  { %p1310_p3 = scmp.ne.s32.totalorder %s34_s25, %s1309_s10  ;;  %p1315_p5 = scmp.lt.s32.totalorder %s1309_s10, %s1309_s10 }
   0xe   :  { %p1316_p6 = por %p1315_p5, %p1314_p4 }
  0x10   :  { %p1317_p7 = pnand %p1316_p6, %p1310_p3 }
  0x12   :  { %1320 = shalt.err (!%p1317_p7)
}
  0x13   :  { %s1418_s11 = smov 64   ;;  %s1419_s12 = smov 4  }
  0x14   :  { %39 = dma.hbm_to_vmem [thread:$0]  %s1591_s1, 6272, %s34_s25, [#allocation6], %s1418_s11, %s1418_s11, %s1419_s12  }
  0x15   :  { %s1420_s15 = smov [#allocation2]   ;;  %s1321_s19 = scalar_lea.hbm %s1590_s0, 224 }
  0x16   :  { %s21_s16 = sshll.u32 %s1420_s15, 4  ;;  %p1322_p8 = scmp.ne.s32.totalorder %s1590_s0, %s1321_s19  ;;  %s22_s16 = int_to_ptr.vmem [resolvable:$true] %s21_s16 }
  0x17   :  { %p1325_p9 = scmp.lt.u32.totalorder %s1321_s19, %s1590_s0 }
  0x19   :  { %p1327_p10 = pnand %p1325_p9, %p1322_p8 }
  0x1b   :  { %1330 = shalt.err (!%p1327_p10)
}
  0x1c   :  { %s1331_s24 = scalar_lea.vmem %s22_s16, 224  ;;  %s1335_s1 = scalar_lea.vmem %s22_s16, 896 }
  0x1d   :  { %p1332_p11 = scmp.ne.s32.totalorder %s22_s16, %s1331_s24  ;;  %p1336_p12 = scmp.lt.s32.totalorder %s22_s16, %s22_s16 }
  0x1e   :  { %p1337_p13 = scmp.lt.s32.totalorder %s1335_s1, %s1331_s24 }
  0x20   :  { %p1338_p0 = por %p1337_p13, %p1336_p12 }
  0x22   :  { %p1339_p1 = pnand %p1338_p0, %p1332_p11 }
  0x24   :  { %1342 = shalt.err (!%p1339_p1)
}
  0x25   :  { %s1421_s25 = smov 224   ;;  %s1422_s26 = smov 14  }
  0x26   :  { %27 = dma.hbm_to_vmem [thread:$0]  %s1590_s0, 224, %s22_s16, [#allocation3], %s1421_s25, %s1421_s25, %s1422_s26  }
  0x27   :  { %s1423_s29 = smov [#allocation7]   ;;  %s1424_s8 = smov [#allocation8]  }
  0x28   :  { %s47_s30 = sshll.u32 %s1423_s29, 4  ;;  %s61_s9 = sshll.u32 %s1424_s8, 4  ;;  %s48_s30 = int_to_ptr.vmem [resolvable:$true] %s47_s30  ;;  %s1498_s9 = int_to_ptr.vmem [resolvable:$true] %s61_s9 }
  0x29   :  { %s1343_s14 = scalar_lea.hbm %s1593_s3, 1024 }
  0x2a   :  { %p1344_p2 = scmp.ne.s32.totalorder %s1593_s3, %s1343_s14  ;;  %p1347_p3 = scmp.lt.u32.totalorder %s1343_s14, %s1593_s3 }
  0x2c   :  { %p1349_p4 = pnand %p1347_p3, %p1344_p2 }
  0x2e   :  { %1352 = shalt.err (!%p1349_p4)
}
  0x2f   :  { %s1353_s0 = scalar_lea.vmem %s48_s30, 1024  ;;  %p1358_p6 = scmp.lt.s32.totalorder %s48_s30, %s48_s30 }
  0x30   :  { %p1354_p5 = scmp.ne.s32.totalorder %s48_s30, %s1353_s0  ;;  %p1359_p7 = scmp.lt.s32.totalorder %s1353_s0, %s1353_s0 }
  0x32   :  { %p1360_p8 = por %p1359_p7, %p1358_p6 }
  0x34   :  { %p1361_p9 = pnand %p1360_p8, %p1354_p5 }
  0x36   :  { %1364 = shalt.err (!%p1361_p9)
}
  0x37   :  { %53 = dma.hbm_to_vmem [thread:$0]  %s1593_s3, 1024, %s48_s30, [#allocation6], %s1418_s11, %s1418_s11, %s1419_s12  }
  0x38   :  { %s1365_s23 = scalar_lea.hbm %s1595_s5, 1024 }
  0x39   :  { %p1366_p10 = scmp.ne.s32.totalorder %s1595_s5, %s1365_s23  ;;  %p1369_p11 = scmp.lt.u32.totalorder %s1365_s23, %s1595_s5 }
  0x3b   :  { %p1371_p12 = pnand %p1369_p11, %p1366_p10 }
  0x3d   :  { %1374 = shalt.err (!%p1371_p12)
}
  0x3e   :  { %s1375_s27 = scalar_lea.vmem %s1498_s9, 1024  ;;  %p1380_p0 = scmp.lt.s32.totalorder %s1498_s9, %s1498_s9 }
  0x3f   :  { %p1376_p13 = scmp.ne.s32.totalorder %s1498_s9, %s1375_s27  ;;  %p1381_p1 = scmp.lt.s32.totalorder %s1375_s27, %s1375_s27 }
  0x41   :  { %p1382_p2 = por %p1381_p1, %p1380_p0 }
  0x43   :  { %p1383_p3 = pnand %p1382_p2, %p1376_p13 }
  0x45   :  { %1386 = shalt.err (!%p1383_p3)
}
  0x46   :  { %67 = dma.hbm_to_vmem [thread:$0]  %s1595_s5, 1024, %s1498_s9, [#allocation9], %s1418_s11, %s1418_s11, %s1419_s12  }
  0x47   :  { %1409 = dma.done.wait [#allocation3], 896  }
  0x48   :  { %1410 = vsyncadd [#allocation3], 4294966400 }
  0x49   :  { %1411 = dma.done.wait [#allocation6], 7296  }
  0x4a   :  { %1412 = vsyncadd [#allocation6], 4294960000 }
  0x4b   :  { %1413 = dma.done.wait [#allocation9], 1024  }
  0x4c   :  { %1414 = vsyncadd [#allocation9], 4294966272  ;;  %v1218_v0 = vld [vmem:[#allocation5 + $0x40] sm:$0xff]   ;;  %v1222_v4 = vld [vmem:[#allocation5 + $0x48] sm:$0xff]   ;;  %v1425_v23 = vmov 1983009808   ;;  %v106_v25 = vlaneseq }
  0x4d   :  { %v1219_v1 = vld [vmem:[#allocation5] sm:$0xff]   ;;  %1072 = vmatprep.subr.bf16.mxu0 %v1218_v0  ;;  %v1223_v5 = vld [vmem:[#allocation5 + $0x8] sm:$0xff]   ;;  %v1226_v8 = vld [vmem:[#allocation5 + $0x50] sm:$0xff]   ;;  %v104_v24 = vunpack.c.l.s4 %v1425_v23  ;;  %v1426_v47 = vmov 0.0   ;;  %vm1427_vm0 = vmmov 0   ;;  %vm583_vm1 = vcmask 130048  }
  0x4e   :  { %v1220_v2 = vld [vmem:[#allocation5 + $0xc0] sm:$0xff]   ;;  %1073 = vmatpush3.bf16.msra.mxu0 %v1219_v1  ;;  %v1224_v6 = vld [vmem:[#allocation5 + $0xc8] sm:$0xff]   ;;  %v1227_v9 = vld [vmem:[#allocation5 + $0x10] sm:$0xff]   ;;  %v107_v31 = vshrl.u32 %v106_v25, 7  ;;  %vm982_vm2 = vcmask 80896  }
  0x4f   :  { %v1221_v3 = vld [vmem:[#allocation5 + $0x80] sm:$0xff]   ;;  %1094 = vmatprep.subr.bf16.mxu1 %v1220_v2  ;;  %1074 = vmatprep.subr.bf16.mxu0 %v1222_v4  ;;  %v1225_v7 = vld [vmem:[#allocation5 + $0x88] sm:$0xff]   ;;  %v1228_v10 = vld [vmem:[#allocation5 + $0xd0] sm:$0xff]   ;;  %v105_v30 = vunpack.c.0.s8 %v104_v24 }
  0x50   :  { %1095 = vmatpush3.bf16.msra.mxu1 %v1221_v3  ;;  %v1229_v11 = vld [vmem:[#allocation5 + $0x90] sm:$0xff]   ;;  %v1230_v12 = vld [vmem:[#allocation5 + $0x58] sm:$0xff]   ;;  %v1234_v16 = vld [vmem:[#allocation5 + $0x60] sm:$0xff]  }
  0x51   :  { %1096 = vmatprep.subr.bf16.mxu1 %v1224_v6  ;;  %v1231_v13 = vld [vmem:[#allocation5 + $0x18] sm:$0xff]   ;;  %v1235_v17 = vld [vmem:[#allocation5 + $0x20] sm:$0xff]   ;;  %v1238_v20 = vld [vmem:[#allocation5 + $0x68] sm:$0xff]   ;;  %v1535_v36 = vsub.s32 %v105_v30, %v107_v31 }
  0x52   :  { %1075 = vmatpush3.bf16.msra.mxu0 %v1223_v5  ;;  %v1232_v14 = vld [vmem:[#allocation5 + $0xd8] sm:$0xff]   ;;  %v1236_v18 = vld [vmem:[#allocation5 + $0xe0] sm:$0xff]   ;;  %v1239_v21 = vld [vmem:[#allocation5 + $0x28] sm:$0xff]  }
  0x53   :  { %1076 = vmatprep.subr.bf16.mxu0 %v1226_v8  ;;  %v1233_v15 = vld [vmem:[#allocation5 + $0x98] sm:$0xff]   ;;  %v1237_v19 = vld [vmem:[#allocation5 + $0xa0] sm:$0xff]   ;;  %v1240_v22 = vld [vmem:[#allocation5 + $0xe8] sm:$0xff]  }
  0x54   :  { %1097 = vmatpush3.bf16.msra.mxu1 %v1225_v7  ;;  %v1241_v26 = vld [vmem:[#allocation5 + $0xa8] sm:$0xff]   ;;  %v1242_v27 = vld [vmem:[#allocation5 + $0x70] sm:$0xff]   ;;  %v1246_v33 = vld [vmem:[#allocation5 + $0x78] sm:$0xff]  }
  0x55   :  { %1098 = vmatprep.subr.bf16.mxu1 %v1228_v10  ;;  %v1243_v28 = vld [vmem:[#allocation5 + $0x30] sm:$0xff]   ;;  %v1247_v34 = vld [vmem:[#allocation5 + $0x38] sm:$0xff]   ;;  %v1254_v42 = vld [vmem:[#allocation5 + $0x140] sm:$0xff]  }
  0x56   :  { %1077 = vmatpush3.bf16.msra.mxu0 %v1227_v9  ;;  %v1244_v29 = vld [vmem:[#allocation5 + $0xf0] sm:$0xff]   ;;  %v1248_v35 = vld [vmem:[#allocation5 + $0xf8] sm:$0xff]   ;;  %v1257_v52 = vld [vmem:[#allocation5 + $0x100] sm:$0xff]  }
  0x57   :  { %1078 = vmatprep.subr.bf16.mxu0 %v1230_v12  ;;  %v1245_v32 = vld [vmem:[#allocation5 + $0xb0] sm:$0xff]   ;;  %v1253_v39 = vld [vmem:[#allocation5 + $0xb8] sm:$0xff]   ;;  %v1258_v55 = vld [vmem:[#allocation5 + $0x148] sm:$0xff]  }
  0x58   :  { %1099 = vmatpush3.bf16.msra.mxu1 %v1229_v11  ;;  %v1249_v37 = vld [vmem:[#allocation2] ss:$14 sps:$4 sm:$0xff]   ;;  %v1251_v38 = vld [vmem:[#allocation2 + $0x1c] ss:$14 sps:$4 sm:$0xff]   ;;  %v1255_v43 = vld [vmem:[#allocation2 + $0x4] ss:$14 sps:$4 sm:$0xff]  }
  0x59   :  { %1100 = vmatprep.subr.bf16.mxu1 %v1232_v14  ;;  %v109_v40 = vrot.slane %v1249_v37, %v1535_v36  ;;  %v123_v41 = vrot.slane %v1251_v38, %v1535_v36  ;;  %v1256_v44 = vld [vmem:[#allocation2 + $0x20] ss:$14 sps:$4 sm:$0xff]   ;;  %v116_v48 = vrot.slane %v1255_v43, %v1535_v36  ;;  %v1264_v63 = vld [vmem:[#allocation5 + $0x160] sm:$0xff]   ;;  %v1276_v5 = vld [vmem:[#allocation2 + $0x24] ss:$14 sps:$4 sm:$0xff]  }
  0x5a   :  { %1079 = vmatpush3.bf16.msra.mxu0 %v1231_v13  ;;  %v130_v49 = vrot.slane %v1256_v44, %v1535_v36  ;;  %v1259_v58 = vld [vmem:[#allocation5 + $0x108] sm:$0xff]   ;;  %v1260_v59 = vld [vmem:[#allocation5 + $0x150] sm:$0xff]   ;;  %v1262_v61 = vld [vmem:[#allocation5 + $0x158] sm:$0xff]   ;;  %v159_v10 = vrot.slane %v1276_v5, %v1535_v36 }
  0x5b   :  { %1080 = vmatprep.subr.bf16.mxu0 %v1234_v16  ;;  %v132_v45 = vcombine.high %v109_v40, %v123_v41  ;;  %v131_v46 = vcombine.low %v109_v40, %v123_v41  ;;  %v1261_v60 = vld [vmem:[#allocation5 + $0x110] sm:$0xff]   ;;  %v1263_v62 = vld [vmem:[#allocation5 + $0x118] sm:$0xff]   ;;  %v1272_v0 = vld [vmem:[#allocation5 + $0x180] sm:$0xff]  }
  0x5c   :  { %1101 = vmatpush3.bf16.msra.mxu1 %v1233_v15  ;;  %v134_v53 = vcombine.high %v116_v48, %v130_v49  ;;  %v133_v54 = vcombine.low %v116_v48, %v130_v49  ;;  %v1265_v1 = vld [vmem:[#allocation5 + $0x120] sm:$0xff]   ;;  %v1266_v4 = vld [vmem:[#allocation5 + $0x168] sm:$0xff]   ;;  %v1278_v6 = vld [vmem:[#allocation2 + $0x28] ss:$14 sps:$4 sm:$0x33]  }
  0x5d   :  { %1102 = vmatprep.subr.bf16.mxu1 %v1236_v18  ;;  %v178_v50 = vpack.c.bf16 %v132_v45, %v132_v45  ;;  %v177_v51 = vpack.c.bf16 %v131_v46, %v131_v46  ;;  %v1273_v2 = vld [vmem:[#allocation2 + $0x8] ss:$14 sps:$4 sm:$0xff]   ;;  %v1275_v3 = vld [vmem:[#allocation2 + $0xc] ss:$14 sps:$4 sm:$0x33]   ;;  %v1267_v9 = vld [vmem:[#allocation5 + $0x128] sm:$0xff]   ;;  %v166_v11 = vrot.slane %v1278_v6, %v1535_v36 }
  0x5e   :  { %1081 = vmatpush3.bf16.msra.mxu0 %v1235_v17  ;;  %v180_v56 = vpack.c.bf16 %v134_v53, %v134_v53  ;;  %v179_v57 = vpack.c.bf16 %v133_v54, %v133_v54  ;;  %v145_v7 = vrot.slane %v1273_v2, %v1535_v36  ;;  %v152_v8 = vrot.slane %v1275_v3, %v1535_v36  ;;  %v1268_v12 = vld [vmem:[#allocation5 + $0x170] sm:$0xff]   ;;  %v1270_v18 = vld [vmem:[#allocation5 + $0x178] sm:$0xff]   ;;  %v1282_v25 = vld [vmem:[#allocation7 + $0x18] sm:$0xff]  }
  0x5f   :  { %1082 = vmatprep.subr.bf16.mxu0 %v1238_v20  ;;  %619 = vmatprep.mubr.bf16.mxu0 %v178_v50  ;;  %v1269_v15 = vld [vmem:[#allocation5 + $0x130] sm:$0xff]   ;;  %v1271_v20 = vld [vmem:[#allocation5 + $0x138] sm:$0xff]   ;;  %v1287_v30 = vld [vmem:[#allocation8] sm:$0xff]  }
  0x60   :  { %1103 = vmatpush3.bf16.msra.mxu1 %v1237_v19  ;;  %659 = vmatprep.mubr.bf16.mxu1 %v180_v56  ;;  %v168_v13 = vcombine.high %v145_v7, %v159_v10  ;;  %v169_v14 = vcombine.low %v152_v8, %v166_v11  ;;  %v167_v19 = vcombine.low %v145_v7, %v159_v10  ;;  %v1280_v23 = vld [vmem:[#allocation7 + $0x8] sm:$0xff]   ;;  %v1281_v24 = vld [vmem:[#allocation7 + $0x10] sm:$0xff]   ;;  %v1003_v37 = vld [vmem:[%s1592_s2] ss:$0 sm:$0xff] }
  0x61   :  { %1104 = vmatprep.subr.bf16.mxu1 %v1240_v22  ;;  %v1279_v22 = vld [vmem:[#allocation7] sm:$0xff]   ;;  %v1288_v31 = vld [vmem:[#allocation8 + $0x8] sm:$0xff]  }
  0x62   :  { %1083 = vmatpush3.bf16.msra.mxu0 %v1239_v21  ;;  %v182_v16 = vpack.c.bf16 %v168_v13, %v168_v13  ;;  %v183_v17 = vpack.c.bf16 %v169_v14, %v169_v14  ;;  %v181_v21 = vpack.c.bf16 %v167_v19, %v167_v19 }
  0x63   :  { %1084 = vmatprep.subr.bf16.mxu0 %v1242_v27  ;;  %v1284_v27 = vld [vmem:[#allocation7 + $0x28] sm:$0xff]  }
  0x64   :  { %1105 = vmatpush3.bf16.msra.mxu1 %v1241_v26  ;;  %v1283_v26 = vld [vmem:[#allocation7 + $0x20] sm:$0xff]  }
  0x65   :  { %1106 = vmatprep.subr.bf16.mxu1 %v1244_v29  ;;  %v1286_v29 = vld [vmem:[#allocation7 + $0x38] sm:$0xff]  }
  0x66   :  { %1085 = vmatpush3.bf16.msra.mxu0 %v1243_v28  ;;  %v1285_v28 = vld [vmem:[#allocation7 + $0x30] sm:$0xff]  }
  0x67   :  { %1086 = vmatprep.subr.bf16.mxu0 %v1246_v33  ;;  %v1290_v33 = vld [vmem:[#allocation8 + $0x18] sm:$0xff]  }
  0x68   :  { %1107 = vmatpush3.bf16.msra.mxu1 %v1245_v32  ;;  %v1289_v32 = vld [vmem:[#allocation8 + $0x10] sm:$0xff]  }
  0x69   :  { %1108 = vmatprep.subr.bf16.mxu1 %v1248_v35  ;;  %v1292_v35 = vld [vmem:[#allocation8 + $0x28] sm:$0xff]  }
  0x6a   :  { %1087 = vmatpush3.bf16.msra.mxu0 %v1247_v34  ;;  %v1291_v34 = vld [vmem:[#allocation8 + $0x20] sm:$0xff]  }
  0x6b   :  { %1116 = vmatprep.subr.bf16.mxu0 %v1254_v42 }
  0x6c   :  { %1109 = vmatpush3.bf16.msra.mxu1 %v1253_v39 }
  0x6d   :  { %1158 = vmatprep.subr.bf16.mxu1 %v1426_v47  ;;  %620 = vmatmul.mubr.bf16.vlgmr.msra.gmra.mrb[0].mxu0 %v177_v51 }
  0x6e   :  { %1117 = vmatpush3.bf16.msra.mxu0 %v1257_v52  ;;  %699 = vmatprep.mubr.bf16.mxu0 %v182_v16 }
  0x6f   :  { %1118 = vmatprep.subr.bf16.mxu0 %v1258_v55  ;;  %660 = vmatmul.mubr.bf16.vlgmr.msra.gmra.mrb[0].mxu1 %v179_v57 }
  0x70   :  { %1160 = vmatprep.mubr.msk.bf16.mxu1 %vm1427_vm0, %v1426_v47  ;;  %1159 = vmatpush3.bf16.msra.mxu1 %v1272_v0  ;;  %v1294_v0 = vld [vmem:[#allocation8 + $0x38] sm:$0xff]  }
  0x71   :  { %1164 = vmatprep.subr.bf16.mxu1 %v1426_v47 }
  0x72   :  { %1119 = vmatpush3.bf16.msra.mxu0 %v1259_v58 }
  0x73   :  { %1120 = vmatprep.subr.bf16.mxu0 %v1260_v59 }
  0x76   :  { %1121 = vmatpush3.bf16.msra.mxu0 %v1261_v60 }
  0x77   :  { %1122 = vmatprep.subr.bf16.mxu0 %v1262_v61  ;;  %1161 = vmatmul.mubr.msk.bf16.vlgmr.msra.gmra.mrb[4].mxu1 %vm583_vm1, %v183_v17 }
  0x78   :  { %1180 = vmatprep.mubr.msk.bf16.mxu1 %vm1427_vm0, %v1426_v47  ;;  %1165 = vmatpush3.bf16.msra.mxu1 %v1279_v22 }
  0x79   :  { %1166 = vmatprep.subr.bf16.mxu1 %v1426_v47 }
  0x7a   :  { %1123 = vmatpush3.bf16.msra.mxu0 %v1263_v62 }
  0x7b   :  { %1124 = vmatprep.subr.bf16.mxu0 %v1264_v63  ;;  %v1293_v63 = vld [vmem:[#allocation8 + $0x30] sm:$0xff]  }
  0x7c   :  { %1167 = vmatpush3.bf16.msra.mxu1 %v1280_v23 }
  0x7d   :  { %1168 = vmatprep.subr.bf16.mxu1 %v1426_v47 }
  0x7e   :  { %1125 = vmatpush3.bf16.msra.mxu0 %v1265_v1  ;;  %v1054_v1 = vld [vmem:[%s1594_s4] ss:$0 sm:$0xff] }
  0x7f   :  { %1126 = vmatprep.subr.bf16.mxu0 %v1266_v4 }
  0x80   :  { %1169 = vmatpush3.bf16.msra.mxu1 %v1281_v24 }
  0x81   :  { %1170 = vmatprep.subr.bf16.mxu1 %v1426_v47 }
  0x82   :  { %1127 = vmatpush3.bf16.msra.mxu0 %v1267_v9  ;;  %v1063_v9 = vld [vmem:[%s1596_s6] ss:$0 sm:$0xff] }
  0x83   :  { %1128 = vmatprep.subr.bf16.mxu0 %v1268_v12 }
  0x84   :  { %1171 = vmatpush3.bf16.msra.mxu1 %v1282_v25 }
  0x85   :  { %1172 = vmatprep.subr.bf16.mxu1 %v1426_v47 }
  0x86   :  { %1129 = vmatpush3.bf16.msra.mxu0 %v1269_v15 }
  0x87   :  { %1130 = vmatprep.subr.bf16.mxu0 %v1270_v18 }
  0x88   :  { %1173 = vmatpush3.bf16.msra.mxu1 %v1283_v26 }
  0x89   :  { %1174 = vmatprep.subr.bf16.mxu1 %v1426_v47 }
  0x8a   :  { %1131 = vmatpush3.bf16.msra.mxu0 %v1271_v20 }
  0x8b   :  { %1184 = vmatprep.subr.bf16.mxu0 %v1426_v47 }
  0x8c   :  { %1175 = vmatpush3.bf16.msra.mxu1 %v1284_v27 }
  0x8d   :  { %700 = vmatmul.mubr.bf16.vlgmr.msra.gmra.mrb[4].mxu0 %v181_v21  ;;  %1176 = vmatprep.subr.bf16.mxu1 %v1426_v47 }
  0x8e   :  { %1200 = vmatprep.mubr.msk.bf16.mxu0 %vm1427_vm0, %v1426_v47  ;;  %1185 = vmatpush3.bf16.msra.mxu0 %v1287_v30 }
  0x8f   :  { %1186 = vmatprep.subr.bf16.mxu0 %v1426_v47 }
  0x90   :  { %1177 = vmatpush3.bf16.msra.mxu1 %v1285_v28 }
  0x91   :  { %1178 = vmatprep.subr.bf16.mxu1 %v1426_v47 }
  0x92   :  { %1187 = vmatpush3.bf16.msra.mxu0 %v1288_v31 }
  0x93   :  { %1188 = vmatprep.subr.bf16.mxu0 %v1426_v47 }
  0x94   :  { %1179 = vmatpush3.bf16.msra.mxu1 %v1286_v29 }
  0x96   :  { %1189 = vmatpush3.bf16.msra.mxu0 %v1289_v32 }
  0x97   :  { %1190 = vmatprep.subr.bf16.mxu0 %v1426_v47 }
  0x9a   :  { %1191 = vmatpush3.bf16.msra.mxu0 %v1290_v33 }
  0x9b   :  { %1192 = vmatprep.subr.bf16.mxu0 %v1426_v47 }
  0x9e   :  { %1193 = vmatpush3.bf16.msra.mxu0 %v1291_v34 }
  0x9f   :  { %1194 = vmatprep.subr.bf16.mxu0 %v1426_v47 }
  0xa2   :  { %1195 = vmatpush3.bf16.msra.mxu0 %v1292_v35 }
  0xa3   :  { %1196 = vmatprep.subr.bf16.mxu0 %v1426_v47 }
  0xa6   :  { %1197 = vmatpush3.bf16.msra.mxu0 %v1293_v63 }
  0xa7   :  { %1198 = vmatprep.subr.bf16.mxu0 %v1426_v47 }
  0xaa   :  { %1199 = vmatpush3.bf16.msra.mxu0 %v1294_v0 }
 0x140   :  { %v1088_v36 = vpop.f32.mrb[0].mxu0 }
 0x141   :  { %v1089_v38 = vpop.f32.mrb[1].mxu0 }
 0x142   :  { %v1090_v39 = vadd.f32 %v1089_v38, %v1088_v36  ;;  %v1091_v40 = vpop.f32.mrb[2].mxu0  ;;  %v1110_v41 = vpop.f32.mrb[0].mxu1 }
 0x143   :  { %v1092_v42 = vpop.f32.mrb[3].mxu0  ;;  %v1111_v44 = vpop.f32.mrb[1].mxu1 }
 0x144   :  { %v622_v43 = vadd.f32 %v1090_v39, %v1003_v37  ;;  %v1112_v45 = vadd.f32 %v1111_v44, %v1110_v41  ;;  %v1113_v46 = vpop.f32.mrb[2].mxu1 }
 0x145   :  { %v1114_v48 = vpop.f32.mrb[3].mxu1 }
 0x146   :  { %v662_v49 = vadd.f32 %v1112_v45, %v622_v43 }
 0x14a   :  { %v741_v50 = vpop.f32.mrb[4].mxu1 }
 0x14b   :  { %v1162_v51 = vpop.f32.mrb[5].mxu1 }
 0x14c   :  { %v744_v52 = vpop.f32.mrb[6].mxu1 }
 0x14d   :  { %v1163_v53 = vpop.f32.mrb[7].mxu1 }
 0x160   :  { %v1132_v54 = vpop.f32.mrb[4].mxu0 }
 0x161   :  { %v1133_v55 = vpop.f32.mrb[5].mxu0 }
 0x162   :  { %v1134_v56 = vadd.f32 %v1133_v55, %v1132_v54  ;;  %v1135_v57 = vpop.f32.mrb[6].mxu0 }
 0x163   :  { %v1136_v58 = vpop.f32.mrb[7].mxu0 }
 0x164   :  { %v702_v59 = vadd.f32 %v1134_v56, %v662_v49 }
 0x166   :  { %v742_v60 = vadd.f32 %v741_v50, %v702_v59 }
 0x168   :  { %v747_v61 = vmax.f32 %v742_v60, 0.0 }
 0x16a   :  { %v748_v62 = vpack.c.bf16 %v747_v61, %v747_v61 }
 0x16c   :  { %1181 = vmatmul.mubr.bf16.vlgmr.msra.gmra.mrb[8].mxu1 %v748_v62 }
 0x23f   :  { %v854_v2 = vpop.f32.mrb[8].mxu1 }
 0x240   :  { %v855_v3 = vadd.f32 %v1054_v1, %v854_v2  ;;  %v1182_v4 = vpop.f32.mrb[9].mxu1 }
 0x241   :  { %v857_v5 = vpop.f32.mrb[10].mxu1 }
 0x242   :  { %v860_v6 = vmax.f32 %v855_v3, 0.0  ;;  %v1183_v7 = vpop.f32.mrb[11].mxu1 }
 0x244   :  { %v861_v8 = vpack.c.bf16 %v860_v6, %v860_v6 }
 0x246   :  { %1201 = vmatmul.mubr.bf16.vlgmr.msra.gmra.mrb[8].mxu0 %v861_v8 }
 0x319   :  { %v967_v10 = vpop.f32.mrb[8].mxu0 }
 0x31a   :  { %v968_v47 = vadd.f32 %v1063_v9, %v967_v10  ;;  %v1202_v11 = vpop.f32.mrb[9].mxu0 }
 0x31b   :  { %v970_v12 = vpop.f32.mrb[10].mxu0 }
 0x31c   :  { %973 = vmax.xlane.f32.xlu0 %v968_v47  ;;  %v1203_v13 = vpop.f32.mrb[11].mxu0 }
 0x3a9   :  { %v974_v14 = vpop.xlane.xlu0 %973 }
 0x3aa   :  { %v975_v15 = vsub.f32 %v968_v47, %v974_v14 }
 0x3ac   :  { %v976_v16 = vmul.f32 1.442695, %v975_v15 }
 0x3ae   :  { %1295 = vpow2.f32 %v976_v16 }
 0x3b8   :  { %v1296_v17 = vpop.eup %1295 }
 0x3b9   :  { %978 = vadd.xlane.f32.xlu0 %v1296_v17 }
 0x446   :  { %v979_v18 = vpop.xlane.xlu0 %978 }
 0x447   :  { %1297 = vrcp.f32 %v979_v18 }
 0x451   :  { %v1298_v19 = vpop.eup %1297 }
 0x452   :  { %v981_v20 = vmul.f32 %v1298_v19, %v1296_v17 }
 0x454   :  { %983 = vst.msk [vmem:[#allocation10] sm:$0xff] %vm982_vm2, %v981_v20 }
 0x455   :  { %988 = vsyncadd [#allocation4], 96  ;;  %s1428_s4 = smov [#allocation10]  }
 0x456   :  { %s989_s6 = sshll.u32 %s1428_s4, 4  ;;  %s990_s6 = int_to_ptr.vmem [resolvable:$true] %s989_s6 }
 0x457   :  { %s1387_s8 = scalar_lea.vmem %s990_s6, 32  ;;  %s1391_s9 = scalar_lea.vmem %s990_s6, 128 }
 0x458   :  { %p1388_p4 = scmp.ne.s32.totalorder %s990_s6, %s1387_s8  ;;  %p1392_p5 = scmp.lt.s32.totalorder %s990_s6, %s990_s6 }
 0x459   :  { %p1393_p6 = scmp.lt.s32.totalorder %s1391_s9, %s1387_s8 }
 0x45b   :  { %p1394_p7 = por %p1393_p6, %p1392_p5 }
 0x45d   :  { %p1395_p8 = pnand %p1394_p7, %p1388_p4 }
 0x45f   :  { %1398 = shalt.err (!%p1395_p8)
}
 0x460   :  { %s1399_s14 = scalar_lea.hbm %s1597_s7, 32 }
 0x461   :  { %p1400_p9 = scmp.ne.s32.totalorder %s1597_s7, %s1399_s14  ;;  %p1403_p10 = scmp.lt.u32.totalorder %s1399_s14, %s1597_s7 }
 0x463   :  { %p1405_p11 = pnand %p1403_p10, %p1400_p9 }
 0x465   :  { %1408 = shalt.err (!%p1405_p11)
}
 0x466   :  { %s1429_s0 = smov 32   ;;  %s1430_s16 = smov 2  }
 0x467   :  { %995 = dma.vmem_to_hbm [thread:$0]  %s990_s6, 32, %s1597_s7, [#allocation4], %s1429_s0, %s1429_s0, %s1430_s16  }
 0x468   :  { %1415 = dma.done.wait [#allocation4], 128  }
 0x469   :  { %1416 = vsyncadd [#allocation4], 4294967168 }
 0x46a   :  { %999 = vsyncpa [#allocation3], 1 }
 0x46b   :  { %1000 = vsyncpa [#allocation6], 1 }
 0x46c   :  { %1001 = vsyncpa [#allocation9], 1 }
 0x46d   :  { %1002 = vsyncpa [#allocation4], 1 }

</bundles_post_ra>
